<compile_context>
chip_gen: v6e
topology: v6e:2x2x1
jax: 0.10.0
libtpu: 0.0.40
codegen_flags: <defaults>
</compile_context>

<pallas_src>
import math

import jax
import jax.numpy as jnp
from jax.experimental import pallas as pl
from jax.experimental.pallas import tpu as pltpu


def _vmem():
    # Whole-array block resident in VMEM (everything here is a few KiB).
    return pl.BlockSpec(memory_space=pltpu.MemorySpace.VMEM)


def _smem():
    return pl.BlockSpec(memory_space=pltpu.MemorySpace.SMEM)


# ----------------------------------------------------------------------------
# Init-time kernel: fused preprocessing incl. the full (loop-invariant) prior chain
# ----------------------------------------------------------------------------

def _bp_init_kernel(a_ia_ref, a_cp_ref, a_pf_ref, s_row_ref,
                    fields_prior_ref, c_ref):
    """All __init__ preprocessing in one kernel.

    fields_prior row 0 ('organization'):
        (inst_prior @ author.m) @ paper.m @ fields.m
        inst_prior @ author.m telescopes to colsum(A_ia)/sum(A_ia).
    fields_prior row 1 ('citation'):
        citation_prior @ paper.m @ fields.m
        citation_prior @ paper.m telescopes to colsum(A_cp)/sum(A_cp).
    c = S_row @ A_pf  (closed-form constant of the per-paper likelihood loop).
    """
    a_ia = a_ia_ref[...]
    a_cp = a_cp_ref[...]
    a_pf = a_pf_ref[...]

    # organization chain: inst_prior @ author.m  ==  colsum(a_ia) / sum(a_ia)
    org_author = jnp.sum(a_ia, axis=0, keepdims=True)                 # (1, A)
    org_author = org_author / jnp.sum(org_author)

    # paper.m = diag(1/rowsum(a_cp)) @ a_cp
    rs_cp = jnp.sum(a_cp, axis=1, keepdims=True)                      # (P, 1)
    paper_m = a_cp * jnp.where(rs_cp > 0.0, 1.0 / rs_cp, 0.0)

    # citation chain: citation_prior @ paper.m  ==  colsum(a_cp) / sum(a_cp)
    cit_paper = jnp.sum(a_cp, axis=0, keepdims=True) / jnp.sum(a_cp)  # (1, P)

    # organization chain through paper.m (requires num_authors == num_papers, as in ref)
    org_paper = jnp.dot(org_author, paper_m,
                        preferred_element_type=jnp.float32)           # (1, P)

    # fields.m = diag(1/rowsum(a_pf)) @ a_pf
    rs_pf = jnp.sum(a_pf, axis=1, keepdims=True)                      # (P, 1)
    fields_m = a_pf * jnp.where(rs_pf > 0.0, 1.0 / rs_pf, 0.0)

    fields_prior_ref[0:1, :] = jnp.dot(org_paper, fields_m,
                                       preferred_element_type=jnp.float32)
    fields_prior_ref[1:2, :] = jnp.dot(cit_paper, fields_m,
                                       preferred_element_type=jnp.float32)

    # closed-form likelihood-loop constant
    c_ref[...] = jnp.dot(s_row_ref[...], a_pf,
                         preferred_element_type=jnp.float32)          # (1, F)


def bp_init(a_ia, a_cp, a_pf, s_row):
    num_fields = a_pf.shape[1]
    return pl.pallas_call(
        _bp_init_kernel,
        out_shape=(jax.ShapeDtypeStruct((2, num_fields), jnp.float32),
                   jax.ShapeDtypeStruct((1, num_fields), jnp.float32)),
        in_specs=[_vmem(), _vmem(), _vmem(), _vmem()],
        out_specs=(_vmem(), _vmem()),
    )(a_ia, a_cp, a_pf, s_row)


# ----------------------------------------------------------------------------
# Forward kernel: ONE fused pallas_call per model forward (all layers batched)
# ----------------------------------------------------------------------------

def _make_bp_forward(num_layers, num_fields):
    """Fused multi-layer BeliefPropagation forward (jitted, single dispatch)."""

    def kernel(l_ref, s0_ref, c_ref, fp_ref, l_out_ref, belief_ref):
        s0 = s0_ref[0]
        # (1) closed-form per-paper likelihood renormalisation loop,
        #     batched over all layers:  L <- L * s0 + c         (L, F)
        l_new = l_ref[...] * s0 + c_ref[...]
        # Re-project onto sum == num_fields (reference renormalises with the
        # measured sum every step; this removes float drift across model calls).
        row_sum = jnp.sum(l_new, axis=1, keepdims=True)               # (L, 1)
        inv = pl.reciprocal(row_sum, approx=True)                     # EUP slot
        inv = inv * (2.0 - row_sum * inv)                             # Newton -> ~f32
        l_new = l_new * (float(num_fields) * inv)
        l_out_ref[...] = l_new

        # (2) fields.get_belief() for the LAST layer only (earlier layers'
        #     beliefs are overwritten in out_dict and never read).
        last = l_new[num_layers - 1:num_layers, :]                    # (1, F)
        u = last * fp_ref[...]                                        # (2, F)
        s = jnp.sum(u, axis=1, keepdims=True)                         # (2, 1)
        r = pl.reciprocal(s, approx=True)
        r = r * (2.0 - s * r)
        belief_ref[...] = u * r

    @jax.jit
    def fwd(l_state, s0, c, fields_prior):
        return pl.pallas_call(
            kernel,
            out_shape=(jax.ShapeDtypeStruct((num_layers, num_fields), jnp.float32),
                       jax.ShapeDtypeStruct((2, num_fields), jnp.float32)),
            in_specs=[_vmem(), _smem(), _vmem(), _vmem()],
            out_specs=(_vmem(), _vmem()),
            input_output_aliases={0: 0},   # likelihood state updated in place
            compiler_params=pltpu.CompilerParams(
                vmem_limit_bytes=4 * 1024 * 1024),
        )(l_state, s0, c, fields_prior)

    return fwd


# ----------------------------------------------------------------------------
# Module translations (plain-Python glue around the fused kernels)
# ----------------------------------------------------------------------------

class BeliefPropagationPallas:
    """Precomputed constants for both relation chains of the reference
    BeliefPropagation (row 0 = 'organization', row 1 = 'citation')."""

    def __init__(self, edge_types):
        a_ia = edge_types[('institution', 'to', 'author')].astype(jnp.float32)
        a_cp = edge_types[('paper', 'cited_by', 'paper')].astype(jnp.float32)
        a_pf = edge_types[('paper', 'to', 'field_of_study')].astype(jnp.float32)
        # (author -> paper adjacency is fetched by the reference but never used
        #  in the arithmetic; paper.m is built from the citation adjacency.)
        num_auth = a_ia.shape[1]
        num_papers, num_fields = a_pf.shape
        assert num_auth == num_papers, \
            "reference's prior matrix chain requires num_authors == num_papers"
        self.num_fields = num_fields

        # Suffix products of the per-paper scale factors F/(F + rowsum_i): these
        # collapse the reference's serial per-paper renormalisation loop into
        #   L_out = L_in * s0 + S_row @ A_pf.
        # Computed once on device at init — no host sync.
        rowsum_pf = jnp.sum(a_pf, axis=1)                              # (P,)
        scale = num_fields / (num_fields + rowsum_pf)
        suffix = jnp.cumprod(scale[::-1])[::-1]                        # S_i = prod_{j>=i}
        self.s0 = suffix[0:1].astype(jnp.float32)                      # (1,) SMEM operand
        s_row = suffix.reshape(1, num_papers).astype(jnp.float32)

        # One fused init kernel: priors + message-matrix normalisation + the full
        # prior @ paper.m @ fields.m chain + the closed-form loop constant.
        self.fields_prior, self.c = bp_init(a_ia, a_cp, a_pf, s_row)


class RGCNConvPallas:
    """Reference RGCNConv: node features pass through unchanged (root_lins is
    commented out / undefined in the reference); only BP beliefs matter."""
    # TODO(synk): reference's self.root_lins MLP is undefined/commented out.

    def __init__(self, in_channels, out_channels):
        self.in_channels = in_channels
        self.out_channels = out_channels


class RGCNPallas:
    def __init__(self, in_channels, hidden_channels, out_channels, num_layers,
                 dropout, num_nodes_dict, x_types, edge_types):
        node_types = list(num_nodes_dict.keys())
        # Deterministic xavier-uniform embeddings for node types w/o features.
        key = jax.random.PRNGKey(42)
        self.embs = {}
        for k in sorted(set(node_types).difference(set(x_types))):
            key, sk = jax.random.split(key)
            n = num_nodes_dict[k]
            bound = math.sqrt(6.0 / (n + in_channels))
            self.embs[k] = jax.random.uniform(sk, (n, in_channels),
                                              minval=-bound, maxval=bound,
                                              dtype=jnp.float32)

        # Shared one-time preprocessing (every layer's BP uses the same edges).
        self.bp = BeliefPropagationPallas(edge_types)

        self.convs = [RGCNConvPallas(in_channels, hidden_channels)]
        for _ in range(num_layers - 2):
            self.convs.append(RGCNConvPallas(hidden_channels, hidden_channels))
        self.convs.append(RGCNConvPallas(hidden_channels, out_channels))
        self.num_layers = len(self.convs)

        # Per-layer fields.likelihood, stacked (L, F): one fused kernel updates
        # every layer's state per model forward.
        self.layer_likelihoods = jnp.ones(
            (self.num_layers, self.bp.num_fields), jnp.float32)

        self._fwd = _make_bp_forward(self.num_layers, self.bp.num_fields)
        self.dropout = dropout

    def __call__(self, x_dict, adj_t_dict):
        x_dict = dict(x_dict)
        for k, e in self.embs.items():
            x_dict[k] = e
        # Reference: F.relu output and fields.message_to_parent(paper) result are
        # discarded, eval-mode dropout is identity -> features pass through.
        # TODO(synk): stochastic dropout (training mode) not modelled.
        out_dict = {key: x for key, x in x_dict.items()}

        # ONE fused pallas_call for the whole layer stack.
        l_new, beliefs = self._fwd(self.layer_likelihoods, self.bp.s0,
                                   self.bp.c, self.bp.fields_prior)
        self.layer_likelihoods = l_new
        out_dict['organization'] = beliefs[0:1]
        out_dict['citation'] = beliefs[1:2]
        return out_dict


# ----------------------------------------------------------------------------
# Main
# ----------------------------------------------------------------------------

if __name__ == "__main__":
    key = jax.random.PRNGKey(0)
    # Small synthetic ogbn-mag-like graph.
    # NOTE: num_authors == num_papers so the reference's matrix chain is
    # shape-compatible, exactly as written.
    num_inst, num_auth, num_papers, num_fields = 8, 16, 16, 32
    in_channels, hidden_channels, out_channels, num_layers = 16, 32, 8, 2

    ks = jax.random.split(key, 8)

    def rand_adj(k, shape, p=0.35):
        a = (jax.random.uniform(k, shape) < p).astype(jnp.float32)
        return a.at[:, 0].set(1.0)  # guarantee non-empty rows (well-defined priors)

    edge_types = {
        ('institution', 'to', 'author'): rand_adj(ks[0], (num_inst, num_auth)),
        ('author', 'to', 'paper'): rand_adj(ks[1], (num_auth, num_papers)),
        ('paper', 'cited_by', 'paper'): rand_adj(ks[2], (num_papers, num_papers)),
        ('paper', 'to', 'field_of_study'): rand_adj(ks[3], (num_papers, num_fields)),
    }

    # paper features: reshape(-1, 1, in_channels) as in the reference
    x_paper = jax.random.normal(ks[4], (num_papers, 1, in_channels),
                                dtype=jnp.float32)
    x_dict = {'paper': x_paper}
    x_types = ['paper']
    num_nodes_dict = {'paper': num_papers, 'author': num_auth,
                      'institution': num_inst, 'field_of_study': num_fields}

    model = RGCNPallas(in_channels, hidden_channels, out_channels, num_layers,
                       dropout=0.5, num_nodes_dict=num_nodes_dict,
                       x_types=x_types, edge_types=edge_types)

    out_dict = model(x_dict, edge_types)

    cit = jax.block_until_ready(out_dict['citation'])
    org = jax.block_until_ready(out_dict['organization'])
    lik = jax.block_until_ready(model.layer_likelihoods)

    assert cit.shape == (1, num_fields) and org.shape == (1, num_fields)
    assert lik.shape == (num_layers, num_fields)
    assert bool(jnp.all(jnp.isfinite(cit))) and bool(jnp.all(jnp.isfinite(org)))
    assert bool(jnp.all(jnp.isfinite(lik)))
    # beliefs are normalised distributions over fields
    assert abs(float(jnp.sum(cit)) - 1.0) < 1e-4
    assert abs(float(jnp.sum(org)) - 1.0) < 1e-4
    # likelihood rows are re-projected onto sum == num_fields
    assert float(jnp.max(jnp.abs(jnp.sum(lik, axis=1) - num_fields))) < 1e-2

    print("KERNEL_OK")
</pallas_src>

<mosaic_0001>
module attributes {stable_mosaic.version = 11 : i64} {
  func.func @_bp_init_kernel(%arg0: memref<8x16xf32, #tpu.memory_space<vmem>>, %arg1: memref<16x16xf32, #tpu.memory_space<vmem>>, %arg2: memref<16x32xf32, #tpu.memory_space<vmem>>, %arg3: memref<1x16xf32, #tpu.memory_space<vmem>>, %arg4: memref<2x32xf32, #tpu.memory_space<vmem>>, %arg5: memref<1x32xf32, #tpu.memory_space<vmem>>) attributes {dimension_semantics = [], scalar_prefetch = 0 : i64, scratch_operands = 0 : i64, tpu.core_type = #tpu.core_type<tc>} {
    %c0 = arith.constant 0 : index
    %c0_0 = arith.constant 0 : index
    %0 = vector.load %arg0[%c0, %c0_0] : memref<8x16xf32, #tpu.memory_space<vmem>>, vector<8x16xf32>
    %c0_1 = arith.constant 0 : index
    %c0_2 = arith.constant 0 : index
    %1 = vector.load %arg1[%c0_1, %c0_2] : memref<16x16xf32, #tpu.memory_space<vmem>>, vector<16x16xf32>
    %c0_3 = arith.constant 0 : index
    %c0_4 = arith.constant 0 : index
    %2 = vector.load %arg2[%c0_3, %c0_4] : memref<16x32xf32, #tpu.memory_space<vmem>>, vector<16x32xf32>
    %cst = arith.constant dense<0.000000e+00> : vector<16xf32>
    %3 = vector.multi_reduction <add>, %0, %cst [0] : vector<8x16xf32> to vector<16xf32>
    %4 = vector.shape_cast %3 : vector<16xf32> to vector<1x16xf32>
    %5 = vector.shape_cast %4 : vector<1x16xf32> to vector<1x1x16xf32>
    %cst_5 = arith.constant dense<0.000000e+00> : vector<1xf32>
    %6 = vector.multi_reduction <add>, %5, %cst_5 [1, 2] : vector<1x1x16xf32> to vector<1xf32>
    %7 = vector.shape_cast %6 : vector<1xf32> to vector<1x1x1xf32>
    %8 = vector.extract %7[0, 0, 0] : f32 from vector<1x1x1xf32>
    %9 = vector.broadcast %8 : f32 to vector<1x16xf32>
    %10 = arith.divf %4, %9 : vector<1x16xf32>
    %cst_6 = arith.constant dense<0.000000e+00> : vector<16xf32>
    %11 = vector.multi_reduction <add>, %1, %cst_6 [1] : vector<16x16xf32> to vector<16xf32>
    %12 = vector.shape_cast %11 : vector<16xf32> to vector<16x1xf32>
    %cst_7 = arith.constant 0.000000e+00 : f32
    %13 = vector.broadcast %cst_7 : f32 to vector<16x1xf32>
    %14 = arith.cmpf ogt, %12, %13 : vector<16x1xf32>
    %cst_8 = arith.constant 1.000000e+00 : f32
    %15 = vector.broadcast %cst_8 : f32 to vector<16x1xf32>
    %16 = arith.divf %15, %12 : vector<16x1xf32>
    %cst_9 = arith.constant 0.000000e+00 : f32
    %17 = vector.broadcast %cst_9 : f32 to vector<16x1xf32>
    %18 = arith.select %14, %16, %17 : vector<16x1xi1>, vector<16x1xf32>
    %19 = vector.broadcast %18 : vector<16x1xf32> to vector<16x16xf32>
    %20 = arith.mulf %1, %19 : vector<16x16xf32>
    %cst_10 = arith.constant dense<0.000000e+00> : vector<16xf32>
    %21 = vector.multi_reduction <add>, %1, %cst_10 [0] : vector<16x16xf32> to vector<16xf32>
    %22 = vector.shape_cast %21 : vector<16xf32> to vector<1x16xf32>
    %23 = vector.shape_cast %1 : vector<16x16xf32> to vector<1x16x16xf32>
    %cst_11 = arith.constant dense<0.000000e+00> : vector<1xf32>
    %24 = vector.multi_reduction <add>, %23, %cst_11 [1, 2] : vector<1x16x16xf32> to vector<1xf32>
    %25 = vector.shape_cast %24 : vector<1xf32> to vector<1x1x1xf32>
    %26 = vector.extract %25[0, 0, 0] : f32 from vector<1x1x1xf32>
    %27 = vector.broadcast %26 : f32 to vector<1x16xf32>
    %28 = arith.divf %22, %27 : vector<1x16xf32>
    %cst_12 = arith.constant dense<0.000000e+00> : vector<1x16xf32>
    %29 = tpu.matmul %10, %20, %cst_12 {dimension_numbers = #tpu.dot_dimension_numbers<[1], [0], [0], [1], [0, 0, 1, 1], [], []>} : vector<1x16xf32>, vector<16x16xf32>, vector<1x16xf32> -> vector<1x16xf32>
    %cst_13 = arith.constant dense<0.000000e+00> : vector<16xf32>
    %30 = vector.multi_reduction <add>, %2, %cst_13 [1] : vector<16x32xf32> to vector<16xf32>
    %31 = vector.shape_cast %30 : vector<16xf32> to vector<16x1xf32>
    %cst_14 = arith.constant 0.000000e+00 : f32
    %32 = vector.broadcast %cst_14 : f32 to vector<16x1xf32>
    %33 = arith.cmpf ogt, %31, %32 : vector<16x1xf32>
    %cst_15 = arith.constant 1.000000e+00 : f32
    %34 = vector.broadcast %cst_15 : f32 to vector<16x1xf32>
    %35 = arith.divf %34, %31 : vector<16x1xf32>
    %cst_16 = arith.constant 0.000000e+00 : f32
    %36 = vector.broadcast %cst_16 : f32 to vector<16x1xf32>
    %37 = arith.select %33, %35, %36 : vector<16x1xi1>, vector<16x1xf32>
    %38 = vector.broadcast %37 : vector<16x1xf32> to vector<16x32xf32>
    %39 = arith.mulf %2, %38 : vector<16x32xf32>
    %cst_17 = arith.constant dense<0.000000e+00> : vector<1x32xf32>
    %40 = tpu.matmul %29, %39, %cst_17 {dimension_numbers = #tpu.dot_dimension_numbers<[1], [0], [0], [1], [0, 0, 1, 1], [], []>} : vector<1x16xf32>, vector<16x32xf32>, vector<1x32xf32> -> vector<1x32xf32>
    %c0_18 = arith.constant 0 : index
    %c0_19 = arith.constant 0 : index
    %41 = vector.load %arg4[%c0_18, %c0_19] : memref<2x32xf32, #tpu.memory_space<vmem>>, vector<1x32xf32>
    tpu.vector_store %arg4[%c0_18, %c0_19], %40 {strides = array<i32>} : memref<2x32xf32, #tpu.memory_space<vmem>>, vector<1x32xf32>,
    %cst_20 = arith.constant dense<0.000000e+00> : vector<1x32xf32>
    %42 = tpu.matmul %28, %39, %cst_20 {dimension_numbers = #tpu.dot_dimension_numbers<[1], [0], [0], [1], [0, 0, 1, 1], [], []>} : vector<1x16xf32>, vector<16x32xf32>, vector<1x32xf32> -> vector<1x32xf32>
    %c1 = arith.constant 1 : index
    %c0_21 = arith.constant 0 : index
    %43 = vector.load %arg4[%c1, %c0_21] : memref<2x32xf32, #tpu.memory_space<vmem>>, vector<1x32xf32>
    tpu.vector_store %arg4[%c1, %c0_21], %42 {strides = array<i32>} : memref<2x32xf32, #tpu.memory_space<vmem>>, vector<1x32xf32>,
    %c0_22 = arith.constant 0 : index
    %c0_23 = arith.constant 0 : index
    %44 = vector.load %arg3[%c0_22, %c0_23] : memref<1x16xf32, #tpu.memory_space<vmem>>, vector<1x16xf32>
    %cst_24 = arith.constant dense<0.000000e+00> : vector<1x32xf32>
    %45 = tpu.matmul %44, %2, %cst_24 {dimension_numbers = #tpu.dot_dimension_numbers<[1], [0], [0], [1], [0, 0, 1, 1], [], []>} : vector<1x16xf32>, vector<16x32xf32>, vector<1x32xf32> -> vector<1x32xf32>
    %c0_25 = arith.constant 0 : index
    %c0_26 = arith.constant 0 : index
    %46 = vector.load %arg5[%c0_25, %c0_26] : memref<1x32xf32, #tpu.memory_space<vmem>>, vector<1x32xf32>
    tpu.vector_store %arg5[%c0_25, %c0_26], %45 {strides = array<i32>} : memref<1x32xf32, #tpu.memory_space<vmem>>, vector<1x32xf32>,
    return
  }
}

</mosaic_0001>

<bundles_post_ra>
// kernel: tpu_custom_call.1
= control target key start
LH: loop header
LB: loop body
LE: loop exit
PB: predicated region body
PF: predicated region fallthrough
CT: control target
= control target key end

     0   :  { %11 = vsyncpa [#allocation3], 0  ;;  %s741_s0 = inlined_call_operand.hbm [shape: f32[8,16], index: 0, kind: input, shape index: {}]   ;;  %s742_s1 = inlined_call_operand.hbm [shape: f32[16,16], index: 1, kind: input, shape index: {}]   ;;  %s743_s2 = inlined_call_operand.hbm [shape: f32[16,32], index: 2, kind: input, shape index: {}]   ;;  %s744_s3 = inlined_call_operand.vmem [shape: f32[1,16], index: 3, kind: input, shape index: {}]   ;;  %s745_s4 = inlined_call_operand.hbm [shape: f32[2,32], index: 4, kind: output, shape index: {0}]   ;;  %s746_s5 = inlined_call_operand.hbm [shape: f32[1,32], index: 5, kind: output, shape index: {1}]  }
   0x1   :  { %12 = vsyncpa [#allocation6], 0 }
   0x2   :  { %13 = vsyncpa [#allocation4], 0 }
   0x3   :  { %14 = vsyncpa [#allocation10], 0  ;;  %s643_s18 = smov [#allocation5]  }
   0x4   :  { %s30_s19 = sshll.u32 %s643_s18, 4  ;;  %s31_s19 = int_to_ptr.vmem [resolvable:$true] %s30_s19 }
   0x5   :  { %s543_s20 = scalar_lea.vmem %s31_s19, 256  ;;  %p548_p1 = scmp.lt.s32.totalorder %s31_s19, %s31_s19 }
   0x6   :  { %p544_p0 = scmp.ne.s32.totalorder %s31_s19, %s543_s20  ;;  %p549_p2 = scmp.lt.s32.totalorder %s543_s20, %s543_s20 }
   0x8   :  { %p550_p3 = por %p549_p2, %p548_p1 }
   0xa   :  { %p551_p4 = pnand %p550_p3, %p544_p0 }
   0xc   :  { %554 = shalt.err (!%p551_p4)
}
   0xd   :  { %s644_s21 = smov 128   ;;  %s645_s22 = smov 8  }
   0xe   :  { %36 = dma.hbm_to_vmem [thread:$0]  %s742_s1, 256, %s31_s19, [#allocation6], %s644_s21, %s644_s21, %s645_s22  }
   0xf   :  { %s646_s25 = smov [#allocation2]   ;;  %s647_s27 = smov [#allocation7]  }
  0x10   :  { %s21_s26 = sshll.u32 %s646_s25, 4  ;;  %s42_s28 = sshll.u32 %s647_s27, 4  ;;  %s22_s26 = int_to_ptr.vmem [resolvable:$true] %s21_s26  ;;  %s43_s28 = int_to_ptr.vmem [resolvable:$true] %s42_s28 }
  0x11   :  { %s563_s29 = scalar_lea.vmem %s22_s26, 128  ;;  %p568_p6 = scmp.lt.s32.totalorder %s22_s26, %s22_s26 }
  0x12   :  { %p564_p5 = scmp.ne.s32.totalorder %s22_s26, %s563_s29  ;;  %p569_p7 = scmp.lt.s32.totalorder %s563_s29, %s563_s29 }
  0x14   :  { %p570_p8 = por %p569_p7, %p568_p6 }
  0x16   :  { %p571_p9 = pnand %p570_p8, %p564_p5 }
  0x18   :  { %574 = shalt.err (!%p571_p9)
}
  0x19   :  { %24 = dma.hbm_to_vmem [thread:$0]  %s741_s0, 128, %s22_s26, [#allocation3]  }
  0x1a   :  { %s583_s7 = scalar_lea.vmem %s43_s28, 256  ;;  %p588_p11 = scmp.lt.s32.totalorder %s43_s28, %s43_s28 }
  0x1b   :  { %p584_p10 = scmp.ne.s32.totalorder %s43_s28, %s583_s7  ;;  %p589_p12 = scmp.lt.s32.totalorder %s583_s7, %s583_s7 }
  0x1d   :  { %p590_p13 = por %p589_p12, %p588_p11 }
  0x1f   :  { %p591_p0 = pnand %p590_p13, %p584_p10 }
  0x21   :  { %594 = shalt.err (!%p591_p0)
}
  0x22   :  { %48 = dma.hbm_to_vmem [thread:$0]  %s743_s2, 256, %s43_s28, [#allocation6], %s644_s21, %s644_s21, %s645_s22  }
  0x23   :  { %635 = dma.done.wait [#allocation3], 128  }
  0x24   :  { %636 = vsyncadd [#allocation3], 4294967168 }
  0x25   :  { %637 = dma.done.wait [#allocation6], 512  }
  0x26   :  { %638 = vsyncadd [#allocation6], 4294966784  ;;  %vm65_vm0 = vcmask 130048   ;;  %v60_v0 = vld [vmem:[#allocation2] sm:$0xff]  ;;  %v62_v1 = vld [vmem:[#allocation5 + $0x8] sm:$0xff]  ;;  %vm73_vm1 = vcmask 122880  }
  0x27   :  { %v61_v2 = vld [vmem:[#allocation5] sm:$0xff]  ;;  %v66_v3 = vsel %vm65_vm0, %v60_v0, 0.0  ;;  %v90_v4 = vsel %vm65_vm0, %v62_v1, 0.0  ;;  %v648_v14 = vmov 0.0   ;;  %vm649_vm2 = vmmov 0   ;;  %v703_v15 = vld [vmem:[#allocation7 + $0x8] sm:$0xff] }
  0x28   :  { %v87_v5 = vsel %vm65_vm0, %v61_v2, 0.0  ;;  %v67_v6 = vrot.slane %v66_v3, 4  ;;  %482 = vmatprep.subr.mxu0 %v648_v14  ;;  %489 = vmatprep.subr.mxu1 %v648_v14  ;;  %vm195_vm3 = vcmask 261120   ;;  %v705_v16 = vld [vmem:[#allocation7] sm:$0xff]  ;;  %v361_v63 = vld [vmem:[%s744_s3] sm:$0x1] }
  0x29   :  { %88 = vadd.xlane.f32.xlu1 %v87_v5  ;;  %v694_v7 = vadd.f32 %v90_v4, %v87_v5  ;;  %486 = vmatprep.mubr.msk.f32.mxu0 %vm649_vm2, %v648_v14  ;;  %v199_v17 = vsel %vm195_vm3, %v703_v15, 0.0  ;;  %v196_v18 = vsel %vm195_vm3, %v705_v16, 0.0  ;;  %vm285_vm8 = vcmask 253952   ;;  %s650_s11 = smov [#allocation8]   ;;  %s651_s13 = smov [#allocation9]  }
  0x2a   :  { %v68_v8 = vadd.f32 %v67_v6, %v66_v3  ;;  %493 = vmatprep.mubr.msk.f32.mxu1 %vm649_vm2, %v648_v14  ;;  %s442_s12 = sshll.u32 %s650_s11, 4  ;;  %s452_s14 = sshll.u32 %s651_s13, 4  ;;  %s443_s12 = int_to_ptr.vmem [resolvable:$true] %s442_s12  ;;  %s453_s14 = int_to_ptr.vmem [resolvable:$true] %s452_s14 }
  0x2b   :  { %v104_v44 = vrot.slane %v694_v7, 4  ;;  %s595_s3 = scalar_lea.vmem %s443_s12, 32  ;;  %p600_p2 = scmp.lt.s32.totalorder %s443_s12, %s443_s12 }
  0x2c   :  { %v69_v9 = vrot.slane %v68_v8, 2  ;;  %p596_p1 = scmp.ne.s32.totalorder %s443_s12, %s595_s3  ;;  %p601_p3 = scmp.lt.s32.totalorder %s595_s3, %s595_s3 }
  0x2d   :  { %110 = vadd.xlane.f32.xlu1 %v694_v7  ;;  %v105_v45 = vadd.f32 %v104_v44, %v694_v7 }
  0x2e   :  { %v70_v10 = vadd.f32 %v69_v9, %v68_v8  ;;  %p602_p4 = por %p601_p3, %p600_p2 }
  0x2f   :  { %v106_v49 = vrot.slane %v105_v45, 2 }
  0x30   :  { %v71_v11 = vrot.slane %v70_v10, 1  ;;  %p603_p5 = pnand %p602_p4, %p596_p1 }
  0x31   :  { %197 = vadd.xlane.f32.xlu1 %v196_v18  ;;  %v107_v50 = vadd.f32 %v106_v49, %v105_v45 }
  0x32   :  { %v72_v12 = vadd.f32 %v71_v11, %v70_v10 }
  0x33   :  { %v108_v51 = vrot.slane %v107_v50, 1 }
  0x34   :  { %v74_v13 = vsel %vm73_vm1, %v72_v12, 0.0 }
  0x35   :  { %75 = vadd.xlane.f32.xlu0 %v74_v13  ;;  %v109_v53 = vadd.f32 %v108_v51, %v107_v50 }
  0x39   :  { %91 = vadd.xlane.f32.xlu0 %v90_v4 }
  0x3d   :  { %200 = vadd.xlane.f32.xlu0 %v199_v17 }
  0xb2   :  { %v89_v19 = vpop.xlane.xlu1 %88 }
  0xb3   :  { %523 = vrcp.f32 %v89_v19  ;;  %vm93_vm4 = vcmp.gt.f32.partialorder %v89_v19, 0.0 }
  0xb6   :  { %v111_v20 = vpop.xlane.xlu1 %110 }
  0xb7   :  { %v112_v21 = vrot.slane %v111_v20, 4 }
  0xb9   :  { %v113_v22 = vadd.f32 %v112_v21, %v111_v20 }
  0xba   :  { %v198_v48 = vpop.xlane.xlu1 %197 }
  0xbb   :  { %v114_v23 = vrot.slane %v113_v22, 2  ;;  %vm202_vm7 = vcmp.gt.f32.partialorder %v198_v48, 0.0 }
  0xbd   :  { %v115_v26 = vadd.f32 %v114_v23, %v113_v22 }
  0xbe   :  { %v76_v24 = vpop.xlane.xlu0 %75 }
  0xbf   :  { %v77_v25 = vrot.slane %v76_v24, 4  ;;  %v116_v30 = vrot.slane %v115_v26, 1 }
  0xc0   :  { %v524_v35 = vpop.eup %523 }
  0xc1   :  { %v78_v27 = vadd.f32 %v77_v25, %v76_v24  ;;  %v117_v33 = vadd.f32 %v116_v30, %v115_v26  ;;  %v99_v36 = vsel %vm93_vm4, %v524_v35, 0.0 }
  0xc2   :  { %v92_v28 = vpop.xlane.xlu0 %91  ;;  %v101_v39 = vmul.f32 %v99_v36, %v61_v2 }
  0xc3   :  { %v79_v29 = vrot.slane %v78_v27, 2  ;;  %525 = vrcp.f32 %v92_v28  ;;  %vm94_vm5 = vcmp.gt.f32.partialorder %v92_v28, 0.0 }
  0xc5   :  { %v80_v31 = vadd.f32 %v79_v29, %v78_v27 }
  0xc6   :  { %v201_v47 = vpop.xlane.xlu0 %200 }
  0xc7   :  { %v81_v32 = vrot.slane %v80_v31, 1  ;;  %vm203_vm6 = vcmp.gt.f32.partialorder %v201_v47, 0.0 }
  0xc9   :  { %v82_v34 = vadd.f32 %v81_v32, %v80_v31 }
  0xcb   :  { %510 = vpush %v82_v34 }
  0xcc   :  { %512 = vpush %v117_v33 }
  0xd0   :  { %v526_v37 = vpop.eup %525 }
  0xd1   :  { %v100_v38 = vsel %vm94_vm5, %v526_v37, 0.0 }
  0xd2   :  { %v102_v40 = vmul.f32 %v100_v38, %v62_v1 }
  0xd4   :  { %483 = vmatpush3.msra.mxu0 %v102_v40 }
  0xd5   :  { %484 = vmatprep.subr.mxu0 %v648_v14 }
  0xd6   :  { %485 = vmatpush3.msra.mxu0 %v101_v39 }
  0xd7   :  { %496 = vmatprep.subr.mxu0 %v648_v14 }
  0xfc   :  { %s511_s0 = spop %510 }
  0xfd   :  { %v84_v41 = vstv %s511_s0  ;;  %s513_s2 = spop %512 }
  0xfe   :  { %527 = vrcp.f32 %v84_v41  ;;  %v119_v46 = vstv %s513_s2 }
  0xff   :  { %529 = vrcp.f32 %v119_v46 }
 0x100   :  { %531 = vrcp.f32 %v201_v47 }
 0x101   :  { %533 = vrcp.f32 %v198_v48 }
 0x10b   :  { %v528_v42 = vpop.eup %527 }
 0x10c   :  { %v86_v43 = vmul.f32 %v528_v42, %v72_v12  ;;  %v530_v52 = vpop.eup %529 }
 0x10d   :  { %v532_v54 = vpop.eup %531  ;;  %v121_v60 = vmul.f32 %v530_v52, %v109_v53 }
 0x10e   :  { %487 = vmatmul.mubr.msk.f32.vlgmr.msra.gmra.mxu0 %vm65_vm0, %v86_v43  ;;  %v534_v55 = vpop.eup %533  ;;  %v209_v56 = vsel %vm203_vm6, %v532_v54, 0.0 }
 0x10f   :  { %500 = vmatprep.mubr.msk.f32.mxu0 %vm649_vm2, %v648_v14  ;;  %v208_v57 = vsel %vm202_vm7, %v534_v55, 0.0  ;;  %v211_v58 = vmul.f32 %v209_v56, %v703_v15 }
 0x110   :  { %v210_v59 = vmul.f32 %v208_v57, %v705_v16 }
 0x111   :  { %490 = vmatpush3.msra.mxu1 %v211_v58  ;;  %497 = vmatpush3.msra.mxu0 %v211_v58 }
 0x112   :  { %491 = vmatprep.subr.mxu1 %v648_v14  ;;  %498 = vmatprep.subr.mxu0 %v648_v14 }
 0x113   :  { %492 = vmatpush3.msra.mxu1 %v210_v59  ;;  %499 = vmatpush3.msra.mxu0 %v210_v59 }
 0x114   :  { %501 = vmatmul.mubr.msk.f32.vlgmr.msra.gmra.mxu0 %vm65_vm0, %v121_v60  ;;  %503 = vmatprep.subr.mxu1 %v648_v14 }
 0x1ce   :  { %v191_v61 = vpop.f32.mrf.mxu0 }
 0x1cf   :  { %494 = vmatmul.mubr.msk.f32.vlgmr.msra.gmra.mxu1 %vm65_vm0, %v191_v61 }
 0x1d0   :  { %504 = vmatpush3.msra.mxu1 %v703_v15  ;;  %v488_v62 = vpop.f32.mrf.mxu0  ;;  %507 = vmatprep.mubr.msk.f32.mxu1 %vm649_vm2, %v648_v14 }
 0x1d1   :  { %505 = vmatprep.subr.mxu1 %v648_v14 }
 0x1d2   :  { %506 = vmatpush3.msra.mxu1 %v705_v16 }
 0x1d3   :  { %508 = vmatmul.mubr.msk.f32.vlgmr.msra.gmra.mxu1 %vm65_vm0, %v361_v63 }
 0x1d4   :  { %v356_v0 = vpop.f32.mrf.mxu0 }
 0x1d5   :  { %360 = vst.msk [vmem:[#allocation8 + $0x1] sm:$0x1] %vm285_vm8, %v356_v0 }
 0x1d6   :  { %v502_v1 = vpop.f32.mrf.mxu0 }
 0x28f   :  { %v281_v2 = vpop.f32.mrf.mxu1 }
 0x290   :  { %286 = vst.msk [vmem:[#allocation8] sm:$0x1] %vm285_vm8, %v281_v2 }
 0x291   :  { %v495_v3 = vpop.f32.mrf.mxu1 }
 0x292   :  { %606 = shalt.err (!%p603_p5)
}
 0x293   :  { %445 = dma.vmem_to_hbm [thread:$0]  %s443_s12, 32, %s745_s4, [#allocation4]   ;;  %v431_v4 = vpop.f32.mrf.mxu1 }
 0x294   :  { %435 = vst.msk [vmem:[#allocation9] sm:$0x1] %vm285_vm8, %v431_v4  ;;  %s615_s17 = scalar_lea.vmem %s453_s14, 16  ;;  %s619_s18 = scalar_lea.vmem %s453_s14, 32 }
 0x295   :  { %v509_v5 = vpop.f32.mrf.mxu1  ;;  %p616_p6 = scmp.ne.s32.totalorder %s453_s14, %s615_s17  ;;  %p620_p7 = scmp.lt.s32.totalorder %s453_s14, %s453_s14 }
 0x296   :  { %p621_p8 = scmp.lt.s32.totalorder %s619_s18, %s615_s17 }
 0x298   :  { %p622_p9 = por %p621_p8, %p620_p7 }
 0x29a   :  { %p623_p10 = pnand %p622_p9, %p616_p6 }
 0x29c   :  { %626 = shalt.err (!%p623_p10)
}
 0x29d   :  { %455 = dma.vmem_to_hbm [thread:$0]  %s453_s14, 16, %s746_s5, [#allocation10]  }
 0x29e   :  { %639 = dma.done.wait [#allocation4], 32  }
 0x29f   :  { %640 = vsyncadd [#allocation4], 4294967264 }
 0x2a0   :  { %641 = dma.done.wait [#allocation10], 16  }
 0x2a1   :  { %642 = vsyncadd [#allocation10], 4294967280 }
 0x2a2   :  { %462 = vsyncpa [#allocation3], 1 }
 0x2a3   :  { %463 = vsyncpa [#allocation6], 1 }
 0x2a4   :  { %464 = vsyncpa [#allocation4], 1 }
 0x2a5   :  { %465 = vsyncpa [#allocation10], 1 }

</bundles_post_ra>
